<compile_context>
chip_gen: v6e
topology: v6e:2x2x1
jax: 0.10.0
libtpu: 0.0.40
codegen_flags: <defaults>
</compile_context>

<pallas_src>
import jax
import jax.numpy as jnp
import numpy as np
from jax.experimental import pallas as pl
from jax.experimental.pallas import tpu as pltpu


def _round_up(v, m):
    return (v + m - 1) // m * m


# ----------------------------------------------------------------------------
# GlobalSAModule kernel: fused MLP + global_mean_pool (segment-sum accumulate)
# ----------------------------------------------------------------------------
def _sa_kernel(xp_ref, batch_ref, w1_ref, b1_ref, w2_ref, b2_ref, out_ref):
    i = pl.program_id(1)                 # row-tile (reduction) axis, innermost

    @pl.when(i == 0)
    def _init():
        out_ref[...] = jnp.zeros_like(out_ref)

    # Layer 1: single fused K=8 matmul (cat([x, pos]) pre-merged on host),
    # bf16 operands, f32 accumulation on the MXU.
    h = jnp.dot(xp_ref[...], w1_ref[...],
                preferred_element_type=jnp.float32) + b1_ref[...]
    h = jnp.maximum(h, 0.0)

    # Layer 2: full (un-tiled) feature width -> layer 1 runs exactly once per
    # row tile and inputs are streamed once.
    f = jnp.dot(h.astype(jnp.bfloat16), w2_ref[...],
                preferred_element_type=jnp.float32) + b2_ref[...]
    f = jnp.maximum(f, 0.0)                                   # [TN, F_pad] f32

    # Per-tile segment sum into the resident [G_pad, F_pad] accumulator via a
    # bf16 one-hot matmul (0/1 exact in bf16 -> single MXU pass).  Padded rows
    # carry an out-of-range id and contribute nothing (segment_sum semantics).
    g_pad = out_ref.shape[0]
    tn = xp_ref.shape[0]
    seg = jax.lax.broadcasted_iota(jnp.int32, (g_pad, tn), 0)
    onehot = (seg == batch_ref[...]).astype(jnp.bfloat16)     # [G_pad, TN]
    out_ref[...] += jnp.dot(onehot, f.astype(jnp.bfloat16),
                            preferred_element_type=jnp.float32)


def prepare_sa_params(params, c_in):
    """One-time weight layout prep (hoisted out of the per-call forward):
    W1 kept whole (K padded 7->8), feature dims padded to 128 lanes, bf16."""
    k_in, hid = params["w1"].shape
    feat = params["w2"].shape[1]
    k_pad = _round_up(k_in, 8)
    h_pad = _round_up(hid, 128)
    f_pad = _round_up(feat, 128)
    w1 = jnp.pad(params["w1"], ((0, k_pad - k_in), (0, h_pad - hid))).astype(jnp.bfloat16)
    b1 = jnp.pad(params["b1"].reshape(1, -1), ((0, 0), (0, h_pad - hid))).astype(jnp.float32)
    w2 = jnp.pad(params["w2"], ((0, h_pad - hid), (0, f_pad - feat))).astype(jnp.bfloat16)
    b2 = jnp.pad(params["b2"].reshape(1, -1), ((0, 0), (0, f_pad - feat))).astype(jnp.float32)
    return dict(w1=w1, b1=b1, w2=w2, b2=b2, c_in=c_in, k_in=k_in, k_pad=k_pad,
                hid=hid, feat=feat, h_pad=h_pad, f_pad=f_pad)


def global_sa_forward(x, pos, batch, prep, num_graphs, *, row_tile=2048):
    """GlobalSAModule.forward with use_mamba=False (constructor default)."""
    # TODO(synk): use_mamba=True is not composed here: the reference feeds a
    # [2N, D] MambaBlock output into global_mean_pool with a length-N batch
    # vector, which raises at runtime.  MambaBlock is a standalone kernel below.
    n = x.shape[0]
    k_in, k_pad = prep["k_in"], prep["k_pad"]
    h_pad, f_pad, feat = prep["h_pad"], prep["f_pad"], prep["feat"]
    g_pad = _round_up(max(num_graphs, 1), 8)

    # Row tiling: multiple of 128 so the [1, row_tile] batch-id block is
    # lane-aligned; rows padded to 2*row_tile so both halves (v7x's two
    # TensorCores) see the same number of tiles.
    row_tile = min(row_tile, _round_up(n, 128))
    n_pad = _round_up(n, 2 * row_tile)
    tiles_per_half = n_pad // (2 * row_tile)

    # Fused torch.cat([x, pos], dim=1); K padded 7->8; bf16 for single-pass MXU.
    # TODO(synk): bf16 coordinates lose ~3 decimal digits; center/scale pos
    # upstream if raw coordinates are large-magnitude.
    xp = jnp.concatenate([x, pos], axis=1).astype(jnp.bfloat16)
    xp = jnp.pad(xp, ((0, n_pad - n), (0, k_pad - k_in)))

    # Padded rows get an out-of-range segment id -> dropped by the one-hot.
    batch_i = jnp.pad(batch.astype(jnp.int32), (0, n_pad - n),
                      constant_values=g_pad).reshape(1, n_pad)

    grid = (2, tiles_per_half)   # (parallel half split, reduction row tiles)

    flops = (2 * n_pad * k_pad * h_pad + 2 * n_pad * h_pad * f_pad
             + 2 * n_pad * g_pad * f_pad)
    bytes_accessed = (xp.size * 2 + batch_i.size * 4
                      + (prep["w1"].size + prep["w2"].size) * 2
                      + (prep["b1"].size + prep["b2"].size) * 4
                      + 2 * g_pad * f_pad * 4)

    partials = pl.pallas_call(
        _sa_kernel,
        out_shape=jax.ShapeDtypeStruct((2, g_pad, f_pad), jnp.float32),
        grid_spec=pltpu.PrefetchScalarGridSpec(
            num_scalar_prefetch=0,
            grid=grid,
            in_specs=[
                pl.BlockSpec((row_tile, k_pad),
                             lambda c, i: (c * tiles_per_half + i, 0)),   # x|pos rows
                pl.BlockSpec((1, row_tile),
                             lambda c, i: (0, c * tiles_per_half + i)),   # batch ids
                pl.BlockSpec((k_pad, h_pad), lambda c, i: (0, 0)),        # W1
                pl.BlockSpec((1, h_pad), lambda c, i: (0, 0)),            # b1
                pl.BlockSpec((h_pad, f_pad), lambda c, i: (0, 0)),        # W2 (full F)
                pl.BlockSpec((1, f_pad), lambda c, i: (0, 0)),            # b2
            ],
            out_specs=pl.BlockSpec((None, g_pad, f_pad), lambda c, i: (c, 0, 0)),
        ),
        compiler_params=pltpu.CompilerParams(
            dimension_semantics=("parallel", "arbitrary"),
            vmem_limit_bytes=48 * 1024 * 1024,
        ),
        cost_estimate=pl.CostEstimate(flops=int(flops), transcendentals=0,
                                      bytes_accessed=int(bytes_accessed)),
    )(xp, batch_i, prep["w1"], prep["b1"], prep["w2"], prep["b2"])

    # Tiny host epilogue: combine the two per-half partial sums, normalize.
    sums = partials[0] + partials[1]
    counts = jnp.zeros((num_graphs,), jnp.float32).at[batch].add(1.0)   # O(N) bincount
    invc = 1.0 / jnp.maximum(counts, 1.0)
    pooled = sums[:num_graphs, :feat] * invc[:, None]

    pos_out = jnp.zeros((num_graphs, 3), dtype=pos.dtype)     # pos.new_zeros((G, 3))
    batch_out = jnp.arange(num_graphs, dtype=batch.dtype)     # torch.arange(G)
    return pooled, pos_out, batch_out


# ----------------------------------------------------------------------------
# MambaBlock kernel (dependent class), x: [B, d_model] -> out: [2B, d_model]
# ----------------------------------------------------------------------------
def _mamba_kernel(x_ref, win_ref, bin_ref, wk1_ref, wk2_ref, bconv_ref,
                  wx_ref, wdt_ref, bdt_ref, wout_ref, bout_ref, out_ref):
    x = x_ref[...].astype(jnp.bfloat16)              # [B, D]
    b = x.shape[0]
    two_b = out_ref.shape[0]                         # 2*B

    # in_proj (bf16 operands, f32 accumulation)
    z_in = jnp.dot(x, win_ref[...].astype(jnp.bfloat16),
                   preferred_element_type=jnp.float32) + bin_ref[...]     # [B, 2D]

    # Depthwise Conv1d(kernel=4, padding=2, groups=2D) on a length-1 sequence:
    # only kernel taps 2 and 1 overlap the single sample -> two output steps.
    z_t0 = wk2_ref[...] * z_in + bconv_ref[...]      # conv output at t=0
    z_t1 = wk1_ref[...] * z_in + bconv_ref[...]      # conv output at t=1

    # z.permute(0,2,1).reshape(-1, 2D): interleave rows (s0t0, s0t1, s1t0, ...)
    # via two tiny 0/1-select matmuls (K = B).
    # TODO(synk): every operand here is sub-(8,128); batching many MambaBlock
    # calls (or leaving this to XLA) is the real win, not in-kernel tweaks.
    row = jax.lax.broadcasted_iota(jnp.int32, (two_b, b), 0)
    col = jax.lax.broadcasted_iota(jnp.int32, (two_b, b), 1)
    sel_even = jnp.logical_and(row % 2 == 0, col == row // 2).astype(jnp.bfloat16)
    sel_odd = jnp.logical_and(row % 2 == 1, col == row // 2).astype(jnp.bfloat16)
    z_flat = (jnp.dot(sel_even, z_t0.astype(jnp.bfloat16),
                      preferred_element_type=jnp.float32)
              + jnp.dot(sel_odd, z_t1.astype(jnp.bfloat16),
                        preferred_element_type=jnp.float32))              # [2B, 2D]

    # dt = softplus(dt_proj(x_proj(x)))
    z_state = jnp.dot(x, wx_ref[...].astype(jnp.bfloat16),
                      preferred_element_type=jnp.float32)                 # [B, S+K]
    pre = jnp.dot(z_state.astype(jnp.bfloat16), wdt_ref[...].astype(jnp.bfloat16),
                  preferred_element_type=jnp.float32) + bdt_ref[...]
    dt = jnp.maximum(pre, 0.0) + jnp.log1p(jnp.exp(-jnp.abs(pre)))        # stable softplus

    # dt.repeat(2,1) then dt.repeat(1,2): plain sublane / lane concats (no MXU).
    dt_rep = jnp.concatenate([dt, dt], axis=0)                            # [2B, D]
    dt_rep = jnp.concatenate([dt_rep, dt_rep], axis=1)                    # [2B, 2D]

    # out_proj(z * dt)
    out_ref[...] = jnp.dot((z_flat * dt_rep).astype(jnp.bfloat16),
                           wout_ref[...].astype(jnp.bfloat16),
                           preferred_element_type=jnp.float32) + bout_ref[...]


def mamba_forward(x, p):
    b, d = x.shape
    vmem = pl.BlockSpec(memory_space=pltpu.MemorySpace.VMEM)
    return pl.pallas_call(
        _mamba_kernel,
        out_shape=jax.ShapeDtypeStruct((2 * b, d), jnp.float32),
        in_specs=[vmem] * 11,
        out_specs=vmem,
    )(x, p["w_in"], p["b_in"], p["conv_k1"], p["conv_k2"], p["conv_b"],
      p["w_x"], p["w_dt"], p["b_dt"], p["w_out"], p["b_out"])


# ----------------------------------------------------------------------------
# Deterministic parameter init (synthetic; no checkpoint load)
# ----------------------------------------------------------------------------
def init_params(key, c_in, hidden, feat, d_model, d_state=16, d_conv=4, expand=2):
    keys = jax.random.split(key, 12)
    s = 0.1
    p_nn = {
        "w1": jax.random.normal(keys[0], (c_in, hidden), jnp.float32) * s,
        "b1": jax.random.normal(keys[1], (1, hidden), jnp.float32) * s,
        "w2": jax.random.normal(keys[2], (hidden, feat), jnp.float32) * s,
        "b2": jax.random.normal(keys[3], (1, feat), jnp.float32) * s,
    }
    e = expand * d_model
    conv_w = jax.random.normal(keys[8], (e, 1, d_conv), jnp.float32) * s     # torch Conv1d weight [C, 1, K]
    p_mamba = {
        "w_in": jax.random.normal(keys[4], (d_model, e), jnp.float32) * s,
        "b_in": jax.random.normal(keys[5], (1, e), jnp.float32) * s,
        "conv_k1": conv_w[:, 0, 1].reshape(1, e),
        "conv_k2": conv_w[:, 0, 2].reshape(1, e),
        "conv_b": jax.random.normal(keys[6], (1, e), jnp.float32) * s,
        "w_x": jax.random.normal(keys[7], (d_model, d_state + d_conv), jnp.float32) * s,
        "w_dt": jax.random.normal(keys[9], (d_state + d_conv, d_model), jnp.float32) * s,
        "b_dt": jax.random.normal(keys[10], (1, d_model), jnp.float32) * s,
        "w_out": jax.random.normal(keys[11], (e, d_model), jnp.float32) * s,
        "b_out": jnp.zeros((1, d_model), jnp.float32),
    }
    return p_nn, p_mamba


# ----------------------------------------------------------------------------
# NumPy references (sanity checking only)
# ----------------------------------------------------------------------------
def _sa_ref(x, pos, batch, p, num_graphs):
    xp = np.concatenate([np.asarray(x, np.float64), np.asarray(pos, np.float64)], axis=1)
    w1 = np.asarray(p["w1"], np.float64); b1 = np.asarray(p["b1"], np.float64)
    w2 = np.asarray(p["w2"], np.float64); b2 = np.asarray(p["b2"], np.float64)
    h = np.maximum(xp @ w1 + b1, 0.0)
    f = np.maximum(h @ w2 + b2, 0.0)
    bidx = np.asarray(batch)
    sums = np.zeros((num_graphs, f.shape[1]))
    cnt = np.zeros((num_graphs,))
    np.add.at(sums, bidx, f)
    np.add.at(cnt, bidx, 1.0)
    return sums / np.maximum(cnt, 1.0)[:, None]


def _mamba_ref(x, p):
    x = np.asarray(x, np.float64)
    b = x.shape[0]
    g = lambda k: np.asarray(p[k], np.float64)
    z_in = x @ g("w_in") + g("b_in")
    z0 = g("conv_k2") * z_in + g("conv_b")
    z1 = g("conv_k1") * z_in + g("conv_b")
    z = np.stack([z0, z1], axis=1).reshape(2 * b, -1)
    dt = np.logaddexp(0.0, (x @ g("w_x")) @ g("w_dt") + g("b_dt"))
    dt = np.tile(dt, (2, 1))
    dt = np.tile(dt, (1, 2))
    return (z * dt) @ g("w_out") + g("b_out")


if __name__ == "__main__":
    key = jax.random.PRNGKey(0)
    k_x, k_pos, k_param, k_m = jax.random.split(key, 4)

    N, C, H, F = 16, 4, 16, 32          # points, in-features, hidden, nn-out features
    num_graphs = 2
    d_model = F                          # mamba_dim matches the nn output width

    x = jax.random.normal(k_x, (N, C), jnp.float32)
    pos = jax.random.normal(k_pos, (N, 3), jnp.float32)
    batch = jnp.concatenate([jnp.zeros((10,), jnp.int32), jnp.ones((6,), jnp.int32)])

    p_nn, p_mamba = init_params(k_param, C + 3, H, F, d_model)
    prep = prepare_sa_params(p_nn, C)    # one-time weight layout prep (hoisted)

    # GlobalSAModule forward (Pallas kernel)
    pooled, pos_out, batch_out = global_sa_forward(x, pos, batch, prep, num_graphs)
    jax.block_until_ready((pooled, pos_out, batch_out))
    np.testing.assert_allclose(np.asarray(pooled),
                               _sa_ref(x, pos, batch, p_nn, num_graphs),
                               rtol=2e-2, atol=2e-2)
    assert pooled.shape == (num_graphs, F)
    assert pos_out.shape == (num_graphs, 3)
    assert batch_out.shape == (num_graphs,)

    # Dependent MambaBlock forward (standalone Pallas kernel)
    xm = jax.random.normal(k_m, (4, d_model), jnp.float32)
    m_out = mamba_forward(xm, p_mamba)
    jax.block_until_ready(m_out)
    np.testing.assert_allclose(np.asarray(m_out), _mamba_ref(xm, p_mamba),
                               rtol=2e-2, atol=2e-2)
    assert m_out.shape == (2 * xm.shape[0], d_model)

    print("KERNEL_OK")
</pallas_src>

<mosaic_0001>
module attributes {stable_mosaic.version = 11 : i64} {
  func.func @_sa_kernel(%arg0: i32, %arg1: i32, %arg2: memref<128x8xbf16, #tpu.memory_space<vmem>>, %arg3: memref<1x128xi32, #tpu.memory_space<vmem>>, %arg4: memref<8x128xbf16, #tpu.memory_space<vmem>>, %arg5: memref<1x128xf32, #tpu.memory_space<vmem>>, %arg6: memref<128x128xbf16, #tpu.memory_space<vmem>>, %arg7: memref<1x128xf32, #tpu.memory_space<vmem>>, %arg8: memref<1x8x128xf32, #tpu.memory_space<vmem>>) attributes {dimension_semantics = [#tpu.dimension_semantics<parallel>, #tpu.dimension_semantics<arbitrary>], iteration_bounds = array<i64: 2, 1>, scalar_prefetch = 0 : i64, scratch_operands = 0 : i64, tpu.core_type = #tpu.core_type<tc>, window_params = [{transform_indices = @transform_0, window_bounds = array<i64: 128, 8>}, {transform_indices = @transform_1, window_bounds = array<i64: 1, 128>}, {pipeline_mode = #tpu.pipeline_mode<synchronous>, transform_indices = @transform_2, window_bounds = array<i64: 8, 128>}, {pipeline_mode = #tpu.pipeline_mode<synchronous>, transform_indices = @transform_3, window_bounds = array<i64: 1, 128>}, {pipeline_mode = #tpu.pipeline_mode<synchronous>, transform_indices = @transform_4, window_bounds = array<i64: 128, 128>}, {pipeline_mode = #tpu.pipeline_mode<synchronous>, transform_indices = @transform_5, window_bounds = array<i64: 1, 128>}, {transform_indices = @transform_6, window_bounds = array<i64: 1, 8, 128>}]} {
    %c0_i32 = arith.constant 0 : i32
    %0 = arith.cmpi eq, %arg1, %c0_i32 : i32
    %1 = arith.extui %0 : i1 to i32
    %c0_i32_0 = arith.constant 0 : i32
    %2 = arith.cmpi ne, %1, %c0_i32_0 : i32
    scf.if %2 {
      %cst_22 = arith.constant 0.000000e+00 : f32
      %34 = vector.broadcast %cst_22 : f32 to vector<8x128xf32>
      %c0_23 = arith.constant 0 : index
      %c0_24 = arith.constant 0 : index
      %c0_25 = arith.constant 0 : index
      %35 = vector.load %arg8[%c0_23, %c0_24, %c0_25] : memref<1x8x128xf32, #tpu.memory_space<vmem>>, vector<1x8x128xf32>
      %36 = vector.shape_cast %35 : vector<1x8x128xf32> to vector<8x128xf32>
      %37 = vector.shape_cast %34 : vector<8x128xf32> to vector<1x8x128xf32>
      tpu.vector_store %arg8[%c0_23, %c0_24, %c0_25], %37 {strides = array<i32>} : memref<1x8x128xf32, #tpu.memory_space<vmem>>, vector<1x8x128xf32>,
    } else {
    }
    %c0 = arith.constant 0 : index
    %c0_1 = arith.constant 0 : index
    %3 = vector.load %arg2[%c0, %c0_1] : memref<128x8xbf16, #tpu.memory_space<vmem>>, vector<128x8xbf16>
    %c0_2 = arith.constant 0 : index
    %c0_3 = arith.constant 0 : index
    %4 = vector.load %arg4[%c0_2, %c0_3] : memref<8x128xbf16, #tpu.memory_space<vmem>>, vector<8x128xbf16>
    %cst = arith.constant dense<0.000000e+00> : vector<128x128xf32>
    %5 = tpu.matmul %3, %4, %cst {dimension_numbers = #tpu.dot_dimension_numbers<[1], [0], [0], [1], [0, 0, 1, 1], [], []>} : vector<128x8xbf16>, vector<8x128xbf16>, vector<128x128xf32> -> vector<128x128xf32>
    %c0_4 = arith.constant 0 : index
    %c0_5 = arith.constant 0 : index
    %6 = vector.load %arg5[%c0_4, %c0_5] : memref<1x128xf32, #tpu.memory_space<vmem>>, vector<1x128xf32>
    %7 = vector.broadcast %6 : vector<1x128xf32> to vector<128x128xf32>
    %8 = arith.addf %5, %7 : vector<128x128xf32>
    %cst_6 = arith.constant 0.000000e+00 : f32
    %9 = vector.broadcast %cst_6 : f32 to vector<128x128xf32>
    %10 = arith.maximumf %8, %9 : vector<128x128xf32>
    %11 = arith.truncf %10 : vector<128x128xf32> to vector<128x128xbf16>
    %c0_7 = arith.constant 0 : index
    %c0_8 = arith.constant 0 : index
    %12 = vector.load %arg6[%c0_7, %c0_8] : memref<128x128xbf16, #tpu.memory_space<vmem>>, vector<128x128xbf16>
    %cst_9 = arith.constant dense<0.000000e+00> : vector<128x128xf32>
    %13 = tpu.matmul %11, %12, %cst_9 {dimension_numbers = #tpu.dot_dimension_numbers<[1], [0], [0], [1], [0, 0, 1, 1], [], []>} : vector<128x128xbf16>, vector<128x128xbf16>, vector<128x128xf32> -> vector<128x128xf32>
    %c0_10 = arith.constant 0 : index
    %c0_11 = arith.constant 0 : index
    %14 = vector.load %arg7[%c0_10, %c0_11] : memref<1x128xf32, #tpu.memory_space<vmem>>, vector<1x128xf32>
    %15 = vector.broadcast %14 : vector<1x128xf32> to vector<128x128xf32>
    %16 = arith.addf %13, %15 : vector<128x128xf32>
    %cst_12 = arith.constant 0.000000e+00 : f32
    %17 = vector.broadcast %cst_12 : f32 to vector<128x128xf32>
    %18 = arith.maximumf %16, %17 : vector<128x128xf32>
    %19 = tpu.iota {dimensions = array<i32: 0>} : vector<8x128xi32>
    %c0_13 = arith.constant 0 : index
    %c0_14 = arith.constant 0 : index
    %20 = vector.load %arg3[%c0_13, %c0_14] : memref<1x128xi32, #tpu.memory_space<vmem>>, vector<1x128xi32>
    %21 = vector.broadcast %20 : vector<1x128xi32> to vector<8x128xi32>
    %22 = arith.cmpi eq, %19, %21 : vector<8x128xi32>
    %23 = arith.extui %22 : vector<8x128xi1> to vector<8x128xi32>
    %24 = arith.sitofp %23 : vector<8x128xi32> to vector<8x128xf32>
    %25 = arith.truncf %24 : vector<8x128xf32> to vector<8x128xbf16>
    %c0_15 = arith.constant 0 : index
    %c0_16 = arith.constant 0 : index
    %c0_17 = arith.constant 0 : index
    %26 = vector.load %arg8[%c0_15, %c0_16, %c0_17] : memref<1x8x128xf32, #tpu.memory_space<vmem>>, vector<1x8x128xf32>
    %27 = vector.shape_cast %26 : vector<1x8x128xf32> to vector<8x128xf32>
    %28 = arith.truncf %18 : vector<128x128xf32> to vector<128x128xbf16>
    %cst_18 = arith.constant dense<0.000000e+00> : vector<8x128xf32>
    %29 = tpu.matmul %25, %28, %cst_18 {dimension_numbers = #tpu.dot_dimension_numbers<[1], [0], [0], [1], [0, 0, 1, 1], [], []>} : vector<8x128xbf16>, vector<128x128xbf16>, vector<8x128xf32> -> vector<8x128xf32>
    %30 = arith.addf %27, %29 : vector<8x128xf32>
    %c0_19 = arith.constant 0 : index
    %c0_20 = arith.constant 0 : index
    %c0_21 = arith.constant 0 : index
    %31 = vector.load %arg8[%c0_19, %c0_20, %c0_21] : memref<1x8x128xf32, #tpu.memory_space<vmem>>, vector<1x8x128xf32>
    %32 = vector.shape_cast %31 : vector<1x8x128xf32> to vector<8x128xf32>
    %33 = vector.shape_cast %30 : vector<8x128xf32> to vector<1x8x128xf32>
    tpu.vector_store %arg8[%c0_19, %c0_20, %c0_21], %33 {strides = array<i32>} : memref<1x8x128xf32, #tpu.memory_space<vmem>>, vector<1x8x128xf32>,
    return
  }
  func.func @transform_0(%arg0: i32, %arg1: i32) -> (i32, i32) {
    %c1_i32 = arith.constant 1 : i32
    %0 = arith.muli %arg0, %c1_i32 : i32
    %1 = arith.addi %0, %arg1 : i32
    %c0_i32 = arith.constant 0 : i32
    %c0_i32_0 = arith.constant 0 : i32
    return %1, %c0_i32 : i32, i32
  }
  func.func @transform_1(%arg0: i32, %arg1: i32) -> (i32, i32) {
    %c1_i32 = arith.constant 1 : i32
    %0 = arith.muli %arg0, %c1_i32 : i32
    %1 = arith.addi %0, %arg1 : i32
    %c0_i32 = arith.constant 0 : i32
    %c0_i32_0 = arith.constant 0 : i32
    return %c0_i32, %1 : i32, i32
  }
  func.func @transform_2(%arg0: i32, %arg1: i32) -> (i32, i32) {
    %c0_i32 = arith.constant 0 : i32
    %c0_i32_0 = arith.constant 0 : i32
    %c0_i32_1 = arith.constant 0 : i32
    return %c0_i32, %c0_i32_0 : i32, i32
  }
  func.func @transform_3(%arg0: i32, %arg1: i32) -> (i32, i32) {
    %c0_i32 = arith.constant 0 : i32
    %c0_i32_0 = arith.constant 0 : i32
    %c0_i32_1 = arith.constant 0 : i32
    return %c0_i32, %c0_i32_0 : i32, i32
  }
  func.func @transform_4(%arg0: i32, %arg1: i32) -> (i32, i32) {
    %c0_i32 = arith.constant 0 : i32
    %c0_i32_0 = arith.constant 0 : i32
    %c0_i32_1 = arith.constant 0 : i32
    return %c0_i32, %c0_i32_0 : i32, i32
  }
  func.func @transform_5(%arg0: i32, %arg1: i32) -> (i32, i32) {
    %c0_i32 = arith.constant 0 : i32
    %c0_i32_0 = arith.constant 0 : i32
    %c0_i32_1 = arith.constant 0 : i32
    return %c0_i32, %c0_i32_0 : i32, i32
  }
  func.func @transform_6(%arg0: i32, %arg1: i32) -> (i32, i32, i32) {
    %c0_i32 = arith.constant 0 : i32
    %c0_i32_0 = arith.constant 0 : i32
    %c0_i32_1 = arith.constant 0 : i32
    return %arg0, %c0_i32, %c0_i32_0 : i32, i32, i32
  }
}

</mosaic_0001>

<bundles_post_ra>
// kernel: tpu_custom_call.1
= control target key start
LH: loop header
LB: loop body
LE: loop exit
PB: predicated region body
PF: predicated region fallthrough
CT: control target
= control target key end

     0   :  { %11 = vsyncpa [#allocation3], 0  ;;  %s1354_s0 = inlined_call_operand.vmem [shape: bf16[256,8], index: 0, kind: input, shape index: {}]   ;;  %s1355_s1 = inlined_call_operand.vmem [shape: s32[1,256], index: 1, kind: input, shape index: {}]   ;;  %s1356_s2 = inlined_call_operand.vmem [shape: bf16[8,128], index: 2, kind: input, shape index: {}]   ;;  %s1357_s3 = inlined_call_operand.vmem [shape: f32[1,128], index: 3, kind: input, shape index: {}]   ;;  %s1358_s4 = inlined_call_operand.vmem [shape: bf16[128,128], index: 4, kind: input, shape index: {}]   ;;  %s1359_s5 = inlined_call_operand.vmem [shape: f32[1,128], index: 5, kind: input, shape index: {}]   ;;  %s1360_s6 = inlined_call_operand.hbm [shape: f32[2,8,128], index: 6, kind: output, shape index: {}]  }
   0x1   :  { %13 = vsyncpa [#allocation3 + $0x1], 0  ;;  %s1186_s21 = smov 0   ;;  %s1188_s22 = smov 0  }
   0x2   :  { %s1190_s23 = smov 0   ;;  %s1192_s24 = smov 0  }
   0x3   :  { %s1194_s25 = smov 0   ;;  %s1196_s26 = smov 0  }
   0x4 LB: > { %s848_s27 = sadd.s32 4294967295, %s1145_s26   ;;  %s849_s28 = sadd.s32 4294967294, %s1145_s26   ;;  %s1145_s26 = sphi %s1196_s26, %s19_s26   ;;  %s1141_s25 = sphi %s1194_s25, %s1367_s25   ;;  %s1137_s24 = sphi %s1192_s24, %s1366_s24   ;;  %s1133_s23 = sphi %s1190_s23, %s1365_s23   ;;  %s1129_s22 = sphi %s1188_s22, %s1364_s22   ;;  %s1125_s21 = sphi %s1186_s21, %s1363_s21  }
   0x5   : > { %s31_s29 = sadd.s32 1, %s1141_s25  ;;  %s178_s30 = sadd.s32 1, %s1133_s23 }
   0x6   : > { %p33_p0 = scmp.ge.s32.totalorder %s31_s29, 2  ;;  %p188_p1 = scmp.ne.s32.totalorder %s1133_s23, %s1129_s22 }
   0x7   : > { %p189_p2 = scmp.eq.s32.totalorder %s848_s27, 1  ;;  %p194_p3 = scmp.ne.s32.totalorder %s1129_s22, %s1125_s21 }
   0x8   : > { %s1369_s29 = smov (%p33_p0, %s31_s29), 0  ;;  %p195_p5 = scmp.eq.s32.totalorder %s849_s28, 1 }
   0x9   : > { %p1226_p4 = por %p189_p2, %p188_p1  ;;  %s175_s8 = ssub.s32 %s1141_s25, %s1369_s29 }
   0xa   : > { %p852_p6 = scmp.ge.s32.totalorder %s1145_s26, 1  ;;  %p176_p7 = scmp.eq.s32.totalorder %s175_s8, 0 }
   0xb   : > { %p1233_p8 = por %p195_p5, %p194_p3  ;;  %p244_p9 = scmp.lt.s32.totalorder %s1145_s26, 3 }
   0xc   : > { %s1239_s10 = scalar_select %p176_p7, %s1133_s23, %s178_s30  }
   0xd   : > { %p245_p10 = pnand %p852_p6, %p244_p9 }
   0xe   : > { %s854_s13 = sshll.u32 (!%p245_p10), %s1137_s24, 4  ;;  %p288_p12 = scmp.lt.s32.totalorder (!%p245_p10), %s1137_s24, 1 }
   0xf   : > { %248 = sbr.rel (%p245_p10) target bundleno = 698 (0x2ba), region = 44  ;;  %p281_p11 = scmp.lt.s32.totalorder (!%p245_p10), %s854_s13, 31 }
  0x10   : > { %s276_s14 = sand.u32 (!%p245_p10), 1, %s1129_s22   ;;  %s887_s16 = sshll.u32 (!%p245_p10), %s1137_s24, 7 }
  0x11   : > { %s853_s15 = sshll.u32 (!%p245_p10), %s276_s14, 3  ;;  %s1308_s27 = scalar_lea.hbm (!%p245_p10), %s1360_s6, %s887_s16 }
  0x12   : > { %s278_s17 = scalar_lea.vmem (!%p245_p10), [#allocation2], %s853_s15  ;;  %s759_s28 = scalar_lea.sflag (!%p245_p10), [#allocation3], %s276_s14 }
  0x13   : > { %s772_s18 = sshll.u32 (!%p245_p10), %s278_s17, 4  ;;  %s1310_s18 = int_to_ptr.vmem [resolvable:$true] %s772_s18 }
  0x14   : > { %v314_v0 = vld [vmem:[%s1356_s2] sm:$0xf]  ;;  %vm387_vm0 = vcmask 1043456   ;;  %v1061_v1 = vld [vmem:[%s1358_s4 + $0x38] sm:$0xff]   ;;  %v1062_v3 = vld [vmem:[%s1358_s4 + $0x30] sm:$0xff]   ;;  %s1371_s13 = smov (!%p281_p11, %s854_s13), 31 }
  0x15   : > { %994 = vmatprep.subr.msk.bf16.mxu0 %vm387_vm0, %v314_v0  ;;  %v389_v2 = vsel %vm387_vm0, %v314_v0, 0  ;;  %942 = vmatprep.subr.bf16.mxu1 %v1061_v1  ;;  %v1063_v4 = vld [vmem:[%s1358_s4 + $0x28] sm:$0xff]   ;;  %s855_s20 = sshll.u32 %s1371_s13, 2  ;;  %vm362_vm1 = vcmask 64512   ;;  %v1064_v5 = vld [vmem:[%s1358_s4 + $0x20] sm:$0xff]   ;;  %v1065_v9 = vld [vmem:[%s1358_s4 + $0x18] sm:$0xff]  }
  0x16   : > { %925 = vmatpush3.bf16.msra.mxu0 %v389_v2  ;;  %943 = vmatpush3.bf16.msra.mxu1 %v1061_v1  ;;  %s284_s30 = scalar_lea.vmem %s1354_s0, %s855_s20  ;;  %v1066_v15 = vld [vmem:[%s1358_s4 + $0x10] sm:$0xff]   ;;  %v1067_v16 = vld [vmem:[%s1358_s4 + $0x8] sm:$0xff]   ;;  %v1068_v17 = vld [vmem:[%s1358_s4] sm:$0xff]   ;;  %vm1148_vm2 = vmmov 0  }
  0x17   : > { %944 = vmatprep.subr.bf16.mxu1 %v1062_v3  ;;  %v1053_v6 = vld [vmem:[%s284_s30] sm:$0xff]   ;;  %v1054_v7 = vld [vmem:[%s284_s30 + $0x8] sm:$0xff]   ;;  %v1055_v8 = vld [vmem:[%s284_s30 + $0x10] sm:$0xff]   ;;  %s289_s8 = scalar_select %p288_p12, %s1137_s24, 1 }
  0x18   : > { %926 = vmatprep.mubr.msk.bf16.mxu0 %vm362_vm1, %v1053_v6  ;;  %v1056_v10 = vld [vmem:[%s284_s30 + $0x18] sm:$0xff]   ;;  %v1057_v11 = vld [vmem:[%s284_s30 + $0x20] sm:$0xff]   ;;  %v1058_v12 = vld [vmem:[%s284_s30 + $0x28] sm:$0xff]   ;;  %s1150_s24 = smov [#allocation2]  }
  0x19   : > { %927 = vmatmul.mubr.msk.bf16.vlgmr.msra.gmra.mxu0 %vm362_vm1, %v1054_v7  ;;  %v1059_v13 = vld [vmem:[%s284_s30 + $0x30] sm:$0xff]   ;;  %v1060_v14 = vld [vmem:[%s284_s30 + $0x38] sm:$0xff]   ;;  %v856_v20 = vld [vmem:[%s1357_s3] ss:$0 sm:$0xff]  ;;  %s290_s13 = scalar_lea.vmem %s1355_s1, %s289_s8  ;;  %s1069_s30 = scalar_lea.vmem %s1310_s18, 128 }
  0x1a   : > { %945 = vmatpush3.bf16.msra.mxu1 %v1062_v3  ;;  %930 = vmatprep.mubr.msk.bf16.mxu0 %vm362_vm1, %v1055_v8  ;;  %p1070_p13 = scmp.ne.s32.totalorder %s1310_s18, %s1069_s30  ;;  %s1073_s8 = sshll.u32 %s1150_s24, 4  ;;  %s1074_s8 = int_to_ptr.vmem [resolvable:$false] %s1073_s8 }
  0x1b   : > { %946 = vmatprep.subr.bf16.mxu1 %v1063_v4  ;;  %s1075_s11 = scalar_lea.vmem %s1074_s8, 256  ;;  %p1076_p2 = scmp.lt.s32.totalorder %s1310_s18, %s1074_s8 }
  0x1c   : > { %p1071_p0 = pnand %p1070_p13, %p1226_p4  ;;  %p1077_p3 = scmp.lt.s32.totalorder %s1075_s11, %s1069_s30 }
  0x1e   : > { %947 = vmatpush3.bf16.msra.mxu1 %v1063_v4  ;;  %p1072_p1 = pneg %p1071_p0  ;;  %p1078_p5 = por %p1077_p3, %p1076_p2 }
  0x1f   : > { %948 = vmatprep.subr.bf16.mxu1 %v1064_v5 }
  0x20   : > { %p1079_p6 = pnand %p1078_p5, %p1072_p1 }
  0x21   : > { %931 = vmatmul.mubr.msk.bf16.gmra.mxu0 %vm362_vm1, %v1056_v10 }
  0x22   : > { %949 = vmatpush3.bf16.msra.mxu1 %v1064_v5  ;;  %934 = vmatprep.mubr.msk.bf16.mxu0 %vm362_vm1, %v1057_v11  ;;  %v1147_v11 = vmov 0.0  }
  0x23   : > { %950 = vmatprep.subr.bf16.mxu1 %v1065_v9  ;;  %974 = vmatprep.subr.bf16.mxu0 %v1147_v11 }
  0x26   : > { %951 = vmatpush3.bf16.msra.mxu1 %v1065_v9 }
  0x27   : > { %952 = vmatprep.subr.bf16.mxu1 %v1066_v15 }
  0x29   : > { %935 = vmatmul.mubr.msk.bf16.gmra.mxu0 %vm362_vm1, %v1058_v12 }
  0x2a   : > { %938 = vmatprep.mubr.msk.bf16.mxu0 %vm362_vm1, %v1059_v13  ;;  %953 = vmatpush3.bf16.msra.mxu1 %v1066_v15 }
  0x2b   : > { %954 = vmatprep.subr.bf16.mxu1 %v1067_v16 }
  0x2e   : > { %955 = vmatpush3.bf16.msra.mxu1 %v1067_v16 }
  0x2f   : > { %956 = vmatprep.subr.bf16.mxu1 %v1068_v17 }
  0x31   : > { %939 = vmatmul.mubr.msk.bf16.gmra.mxu0 %vm362_vm1, %v1060_v14 }
  0x32   : > { %957 = vmatpush3.bf16.msra.mxu1 %v1068_v17  ;;  %990 = vmatprep.mubr.msk.bf16.mxu0 %vm1148_vm2, %v1147_v11 }
  0xd9   : > { %v928_v18 = vpop.f32.mrf.mxu0 }
  0xda   : > { %v434_v24 = vadd.f32 %v928_v18, %v856_v20 }
  0xdb   : > { %v425_v19 = vpop.f32.mrf.mxu0 }
  0xdc   : > { %v426_v22 = vadd.f32 %v856_v20, %v425_v19  ;;  %v490_v31 = vmax.f32 %v434_v24, 0.0 }
  0xdd   : > { %v929_v21 = vpop.f32.mrf.mxu0 }
  0xde   : > { %v437_v23 = vadd.f32 %v929_v21, %v856_v20  ;;  %v488_v29 = vmax.f32 %v426_v22, 0.0 }
  0xdf   : > { %v428_v25 = vpop.f32.mrf.mxu0 }
  0xe0   : > { %v429_v26 = vadd.f32 %v856_v20, %v428_v25  ;;  %v491_v27 = vmax.f32 %v437_v23, 0.0  ;;  %v873_v25 = vld [vmem:[%s1359_s5] ss:$0 sm:$0xff] }
  0xe1   : > { %v932_v28 = vpop.f32.mrf.mxu0 }
  0xe2   : > { %v489_v30 = vmax.f32 %v429_v26, 0.0  ;;  %v505_v34 = vpack.c.bf16 %v491_v27, %v490_v31  ;;  %v450_v38 = vadd.f32 %v932_v28, %v856_v20 }
  0xe3   : > { %v441_v32 = vpop.f32.mrf.mxu0 }
  0xe4   : > { %v504_v33 = vpack.c.bf16 %v489_v30, %v488_v29  ;;  %v442_v36 = vadd.f32 %v856_v20, %v441_v32  ;;  %v494_v45 = vmax.f32 %v450_v38, 0.0 }
  0xe5   : > { %v933_v35 = vpop.f32.mrf.mxu0 }
  0xe6   : > { %v453_v37 = vadd.f32 %v933_v35, %v856_v20  ;;  %958 = vmatprep.mubr.bf16.mxu1 %v504_v33  ;;  %v492_v43 = vmax.f32 %v442_v36, 0.0 }
  0xe7   : > { %v444_v39 = vpop.f32.mrf.mxu0  ;;  %959 = vmatmul.mubr.bf16.vlgmr.msra.gmra.mxu1 %v505_v34 }
  0xe8   : > { %v445_v40 = vadd.f32 %v856_v20, %v444_v39  ;;  %v495_v41 = vmax.f32 %v453_v37, 0.0 }
  0xe9   : > { %v936_v42 = vpop.f32.mrf.mxu0 }
  0xea   : > { %v493_v44 = vmax.f32 %v445_v40, 0.0  ;;  %v507_v48 = vpack.c.bf16 %v495_v41, %v494_v45  ;;  %v466_v52 = vadd.f32 %v936_v42, %v856_v20 }
  0xeb   : > { %v457_v46 = vpop.f32.mrf.mxu0 }
  0xec   : > { %v506_v47 = vpack.c.bf16 %v493_v44, %v492_v43  ;;  %v458_v50 = vadd.f32 %v856_v20, %v457_v46  ;;  %v498_v59 = vmax.f32 %v466_v52, 0.0 }
  0xed   : > { %v937_v49 = vpop.f32.mrf.mxu0 }
  0xee   : > { %v469_v51 = vadd.f32 %v937_v49, %v856_v20  ;;  %962 = vmatprep.mubr.bf16.mxu1 %v506_v47  ;;  %v496_v57 = vmax.f32 %v458_v50, 0.0 }
  0xef   : > { %v460_v53 = vpop.f32.mrf.mxu0  ;;  %963 = vmatmul.mubr.bf16.gmra.mxu1 %v507_v48 }
  0xf0   : > { %v461_v54 = vadd.f32 %v856_v20, %v460_v53  ;;  %v499_v55 = vmax.f32 %v469_v51, 0.0 }
  0xf1   : > { %v940_v56 = vpop.f32.mrf.mxu0 }
  0xf2   : > { %v497_v58 = vmax.f32 %v461_v54, 0.0  ;;  %v509_v62 = vpack.c.bf16 %v499_v55, %v498_v59  ;;  %v482_v2 = vadd.f32 %v940_v56, %v856_v20 }
  0xf3   : > { %v473_v60 = vpop.f32.mrf.mxu0 }
  0xf4   : > { %v508_v61 = vpack.c.bf16 %v497_v58, %v496_v57  ;;  %v474_v0 = vadd.f32 %v856_v20, %v473_v60  ;;  %v502_v8 = vmax.f32 %v482_v2, 0.0  ;;  %v696_v60 = vlaneseq }
  0xf5   : > { %v941_v63 = vpop.f32.mrf.mxu0 }
  0xf6   : > { %v485_v1 = vadd.f32 %v941_v63, %v856_v20  ;;  %966 = vmatprep.mubr.bf16.mxu1 %v508_v61  ;;  %v500_v6 = vmax.f32 %v474_v0, 0.0  ;;  %v697_v2 = vshrl.u32 %v696_v60, 7 }
  0xf7   : > { %v476_v3 = vpop.f32.mrf.mxu0  ;;  %967 = vmatmul.mubr.bf16.gmra.mxu1 %v509_v62 }
  0xf8   : > { %v477_v4 = vadd.f32 %v856_v20, %v476_v3  ;;  %v503_v5 = vmax.f32 %v485_v1, 0.0 }
  0xfa   : > { %v501_v7 = vmax.f32 %v477_v4, 0.0  ;;  %v511_v10 = vpack.c.bf16 %v503_v5, %v502_v8  ;;  %v882_v5 = vld [vmem:[%s290_s13] ss:$0 sm:$0xff]  ;;  %v1149_v8 = vmov 1.0|1.0  }
  0xfb   : > { %vm703_vm3 = vcmp.eq.s32.totalorder %v697_v2, %v882_v5 }
  0xfc   : > { %v510_v9 = vpack.c.bf16 %v501_v7, %v500_v6  ;;  %vm884_vm4 = vmpackc.low %vm703_vm3, %vm703_vm3 }
  0xfe   : > { %970 = vmatprep.mubr.bf16.mxu1 %v510_v9 }
  0xff   : > { %971 = vmatmul.mubr.bf16.gmra.mxu1 %v511_v10 }
 0x1a7   : > { %v960_v12 = vpop.f32.mrf.mxu1 }
 0x1a8   : > { %v626_v58 = vadd.f32 %v960_v12, %v873_v25 }
 0x1a9   : > { %v1285_v13 = vpop.f32.mrf.mxu1 }
 0x1aa   : > { %v682_v0 = vmax.f32 %v626_v58, 0.0  ;;  %v618_v1 = vadd.f32 %v873_v25, %v1285_v13 }
 0x1ab   : > { %v961_v14 = vpop.f32.mrf.mxu1 }
 0x1ac   : > { %v629_v55 = vadd.f32 %v961_v14, %v873_v25  ;;  %v680_v6 = vmax.f32 %v618_v1, 0.0 }
 0x1ad   : > { %v620_v15 = vpop.f32.mrf.mxu1 }
 0x1ae   : > { %v683_v61 = vmax.f32 %v629_v55, 0.0  ;;  %v621_v62 = vadd.f32 %v873_v25, %v620_v15 }
 0x1af   : > { %v964_v16 = vpop.f32.mrf.mxu1 }
 0x1b0   : > { %v642_v48 = vadd.f32 %v964_v16, %v873_v25  ;;  %v709_v3 = vpack.c.bf16 %v683_v61, %v682_v0  ;;  %v681_v4 = vmax.f32 %v621_v62, 0.0 }
 0x1b1   : > { %v633_v17 = vpop.f32.mrf.mxu1 }
 0x1b2   : > { %v686_v53 = vmax.f32 %v642_v48, 0.0  ;;  %v634_v54 = vadd.f32 %v873_v25, %v633_v17  ;;  %v708_v7 = vpack.c.bf16 %v681_v4, %v680_v6 }
 0x1b3   : > { %v965_v18 = vpop.f32.mrf.mxu1 }
 0x1b4   : > { %v645_v45 = vadd.f32 %v965_v18, %v873_v25  ;;  %v684_v59 = vmax.f32 %v634_v54, 0.0 }
 0x1b5   : > { %v636_v19 = vpop.f32.mrf.mxu1 }
 0x1b6   : > { %v687_v50 = vmax.f32 %v645_v45, 0.0  ;;  %v637_v51 = vadd.f32 %v873_v25, %v636_v19 }
 0x1b7   : > { %v968_v20 = vpop.f32.mrf.mxu1 }
 0x1b8   : > { %v658_v38 = vadd.f32 %v968_v20, %v873_v25  ;;  %v711_v56 = vpack.c.bf16 %v687_v50, %v686_v53  ;;  %v685_v57 = vmax.f32 %v637_v51, 0.0 }
 0x1b9   : > { %v649_v21 = vpop.f32.mrf.mxu1 }
 0x1ba   : > { %v690_v43 = vmax.f32 %v658_v38, 0.0  ;;  %v650_v44 = vadd.f32 %v873_v25, %v649_v21  ;;  %v710_v63 = vpack.c.bf16 %v685_v57, %v684_v59 }
 0x1bb   : > { %v969_v22 = vpop.f32.mrf.mxu1 }
 0x1bc   : > { %v661_v35 = vadd.f32 %v969_v22, %v873_v25  ;;  %v688_v49 = vmax.f32 %v650_v44, 0.0 }
 0x1bd   : > { %v652_v23 = vpop.f32.mrf.mxu1 }
 0x1be   : > { %v691_v40 = vmax.f32 %v661_v35, 0.0  ;;  %v653_v41 = vadd.f32 %v873_v25, %v652_v23 }
 0x1bf   : > { %v972_v24 = vpop.f32.mrf.mxu1 }
 0x1c0   : > { %v674_v27 = vadd.f32 %v972_v24, %v873_v25  ;;  %v713_v46 = vpack.c.bf16 %v691_v40, %v690_v43  ;;  %v689_v47 = vmax.f32 %v653_v41, 0.0 }
 0x1c1   : > { %v665_v26 = vpop.f32.mrf.mxu1 }
 0x1c2   : > { %v694_v31 = vmax.f32 %v674_v27, 0.0  ;;  %v666_v32 = vadd.f32 %v873_v25, %v665_v26  ;;  %v712_v52 = vpack.c.bf16 %v689_v47, %v688_v49 }
 0x1c3   : > { %v973_v28 = vpop.f32.mrf.mxu1 }
 0x1c4   : > { %v677_v29 = vadd.f32 %v973_v28, %v873_v25  ;;  %v692_v39 = vmax.f32 %v666_v32, 0.0 }
 0x1c5   : > { %v668_v30 = vpop.f32.mrf.mxu1 }
 0x1c6   : > { %v695_v33 = vmax.f32 %v677_v29, 0.0  ;;  %v669_v34 = vadd.f32 %v873_v25, %v668_v30 }
 0x1c8   : > { %v715_v36 = vpack.c.bf16 %v695_v33, %v694_v31  ;;  %v693_v37 = vmax.f32 %v669_v34, 0.0 }
 0x1ca   : > { %975 = vmatpush3.bf16.msra.mxu0 %v715_v36  ;;  %v714_v42 = vpack.c.bf16 %v693_v37, %v692_v39 }
 0x1cb   : > { %976 = vmatprep.subr.bf16.mxu0 %v1147_v11 }
 0x1ce   : > { %977 = vmatpush3.bf16.msra.mxu0 %v714_v42 }
 0x1cf   : > { %978 = vmatprep.subr.bf16.mxu0 %v1147_v11 }
 0x1d2   : > { %979 = vmatpush3.bf16.msra.mxu0 %v713_v46 }
 0x1d3   : > { %980 = vmatprep.subr.bf16.mxu0 %v1147_v11 }
 0x1d6   : > { %981 = vmatpush3.bf16.msra.mxu0 %v712_v52 }
 0x1d7   : > { %982 = vmatprep.subr.bf16.mxu0 %v1147_v11 }
 0x1da   : > { %983 = vmatpush3.bf16.msra.mxu0 %v711_v56 }
 0x1db   : > { %984 = vmatprep.subr.bf16.mxu0 %v1147_v11 }
 0x1de   : > { %985 = vmatpush3.bf16.msra.mxu0 %v710_v63 }
 0x1df   : > { %986 = vmatprep.subr.bf16.mxu0 %v1147_v11 }
 0x1e2   : > { %987 = vmatpush3.bf16.msra.mxu0 %v709_v3 }
 0x1e3   : > { %988 = vmatprep.subr.bf16.mxu0 %v1147_v11 }
 0x1e6   : > { %989 = vmatpush3.bf16.msra.mxu0 %v708_v7 }
 0x1e9   : > { %991 = vmatmul.mubr.msk.bf16.vlgmr.msra.gmra.mxu0 %vm884_vm4, %v1149_v8 }
 0x2a9   : > { %v750_v9 = vpop.f32.mrf.mxu0 }
 0x2aa   : > { %757 = vst [vmem:[%s278_s17] sm:$0xff] %v750_v9 }
 0x2ab   : > { %v992_v10 = vpop.f32.mrf.mxu0 }
 0x2ad   : > { %v753_v11 = vpop.f32.mrf.mxu0 }
 0x2ae   : > { %1082 = shalt.err (!%p1079_p6)
}
 0x2af   : > { %s1083_s12 = scalar_lea.hbm %s1308_s27, 128  ;;  %s1087_s15 = scalar_lea.hbm %s1360_s6, 256 }
 0x2b0   : > { %p1084_p7 = scmp.ne.s32.totalorder %s1308_s27, %s1083_s12  ;;  %p1088_p11 = scmp.lt.s32.totalorder %s1308_s27, %s1360_s6 }
 0x2b1   : > { %p1089_p12 = scmp.lt.s32.totalorder %s1087_s15, %s1083_s12 }
 0x2b2   : > { %p1085_p9 = pnand %p1084_p7, %p1226_p4 }
 0x2b3   : > { %p1090_p13 = por %p1089_p12, %p1088_p11 }
 0x2b4   : > { %p1086_p10 = pneg %p1085_p9 }
 0x2b6   : > { %p1091_p0 = pnand %p1090_p13, %p1086_p10 }
 0x2b8   : > { %1094 = shalt.err (!%p1091_p0)
}
 0x2b9   : > { %995 = dma.vmem_to_hbm [thread:$0]  (%p1226_p4), %s1310_s18, 128, %s1308_s27, %s759_s28   ;;  %v993_v12 = vpop.f32.mrf.mxu0 }
 0x2ba PF: > { %p1001_p1 = scmp.ge.s32.totalorder %s1145_s26, 2  ;;  %s784_s19 = sand.u32 1, %s1125_s21  }
 0x2bb   : > { %s785_s20 = scalar_lea.sflag [#allocation3], %s784_s19 }
 0x2bc   : > { %p998_p2 = pnand %p1001_p1, %p1233_p8 }
 0x2be   : > { %p999_p3 = pneg %p998_p2 }
 0x2c0   : > { %1120 = dma.done.wait (%p999_p3), %s785_s20, 128  }
 0x2c1   : > { %1122 = vsyncadd (%p999_p3), %s785_s20, 4294967168  ;;  %s19_s26 = sadd.s32 1, %s1145_s26   ;;  %s1363_s21 = smov %s1129_s22 }
 0x2c2   : > { %p16_p5 = scmp.ge.s32.totalorder %s19_s26, 4   ;;  %s1364_s22 = smov %s1133_s23 }
 0x2c3   : > { %s1365_s23 = smov %s1239_s10  ;;  %s1366_s24 = smov %s1141_s25 }
 0x2c4   : > { %s1367_s25 = smov %s1369_s29  ;;  %18 = sbr.rel (!%p16_p5) target bundleno = 4 (0x4), region = 86 }
 0x2c9   :  { %790 = vsyncpa [#allocation3], 1 }
 0x2ca   :  { %792 = vsyncpa [#allocation3 + $0x1], 1 }

</bundles_post_ra>
